<compile_context>
chip_gen: v7x
topology: tpu7x:2x2x1
jax: 0.10.0
libtpu: 0.0.40
codegen_flags: <defaults>
</compile_context>

<pallas_src>
import math

import jax
import jax.numpy as jnp
from jax.experimental import pallas as pl
from jax.experimental.pallas import tpu as pltpu

# Below this size the pallas_call fixed overhead (~1-5 us) dwarfs the copy.
_SMALL_INPUT_BYTES = 256 * 1024


def _make_clone_kernel(slices):
    """Build a pure-DMA clone kernel copying `slices` (static (start, size)
    windows along dim 0) with all DMA starts issued before any wait, so the
    K descriptors are concurrently in flight."""
    num_slices = len(slices)

    def kernel(x_hbm_ref, o_hbm_ref):
        def body(sem):
            copies = []
            # Issue every start first ...
            for i, (start, size) in enumerate(slices):
                cp = pltpu.make_async_copy(
                    x_hbm_ref.at[pl.ds(start, size)],
                    o_hbm_ref.at[pl.ds(start, size)],
                    sem.at[i],
                )
                cp.start()
                copies.append(cp)
            # ... then wait on all of them (starts-before-waits => overlap).
            for cp in copies:
                cp.wait()

        pl.run_scoped(body, pltpu.SemaphoreType.DMA((num_slices,)))

    return kernel


def _num_dma_slices(nbytes, leading_dim):
    """Chip- and size-aware number of concurrent DMA slices."""
    kind = ""
    try:
        kind = jax.devices()[0].device_kind.lower()
    except Exception:  # pragma: no cover - defensive, e.g. no devices yet
        pass
    if "v5" in kind:
        k_max = 2          # v5e: 1-2 DMAs already saturate ~0.8 TB/s HBM
    elif "v6" in kind:
        k_max = 4          # v6e: 2-4 in-flight copies recover last 10-30%
    else:
        k_max = 8          # v7x / unknown newer: more concurrency toward 3.2 TB/s
    # Keep each slice >= ~8 MiB so we never pay descriptor overhead for nothing.
    k = max(1, min(k_max, nbytes // (8 * 1024 * 1024)))
    return int(max(1, min(k, leading_dim)))


def view_flatten_clone(x, *, donate=False, force_kernel=False, num_slices=None):
    """Equivalent of torch: x.view(x.size(0), -1).clone().

    donate=True       -> caller does not need a distinct buffer; skip the copy
                         entirely (zero HBM traffic), semantics are identical
                         under JAX immutability.
    force_kernel=True -> always run the Pallas DMA-clone (used for testing).
    num_slices        -> override the automatic DMA concurrency (testing/tuning).
    """
    if x.ndim < 1:
        raise ValueError("View expects x with at least 1 dimension (x.size(0)).")

    n = x.shape[0]
    f = int(math.prod(x.shape[1:])) if x.ndim > 1 else 1
    # NOTE: itemsize mis-states sub-byte dtypes (int4/fp8-packed); only used as
    # a scheduling hint + slice-count heuristic, data is copied correctly.
    nbytes = int(x.size) * x.dtype.itemsize

    # Fast paths: donated buffer, or tiny input where fixed overhead dominates.
    if donate or (not force_kernel and nbytes < _SMALL_INPUT_BYTES):
        return x.reshape(n, f)

    leading = x.shape[0]
    k = num_slices if num_slices is not None else _num_dma_slices(nbytes, leading)
    k = int(max(1, min(k, leading)))

    # Static slice boundaries along dim 0 (resolved at trace time).
    base, rem = divmod(leading, k)
    slices = []
    start = 0
    for i in range(k):
        size = base + (1 if i < rem else 0)
        slices.append((start, size))
        start += size

    out = pl.pallas_call(
        _make_clone_kernel(tuple(slices)),
        # Copy in the NATIVE shape; flatten afterwards on our own contiguous
        # output so no hidden pre-kernel layout copy can ever be introduced.
        out_shape=jax.ShapeDtypeStruct(x.shape, x.dtype),
        # Leave input and output in place (HBM); the kernel issues DMAs itself
        # instead of routing HBM -> VMEM -> vreg -> VMEM -> HBM.
        in_specs=[pl.BlockSpec(memory_space=pl.ANY)],
        out_specs=pl.BlockSpec(memory_space=pl.ANY),
        # Accurate memory-bound cost (read + write) for the XLA scheduler.
        cost_estimate=pl.CostEstimate(
            flops=0, transcendentals=0, bytes_accessed=2 * nbytes
        ),
    )(x)

    # Reshaping the kernel's freshly written contiguous output is free metadata.
    return out.reshape(n, f)


if __name__ == "__main__":
    key = jax.random.PRNGKey(0)
    # Small NCHW input consistent with a typical conv feature map.
    x = jax.random.normal(key, (2, 4, 16, 16), dtype=jnp.float32)
    ref = x.reshape(x.shape[0], -1)

    # 1) Default path: small input -> fast path (no kernel launch).
    out_fast = jax.block_until_ready(view_flatten_clone(x))
    assert out_fast.shape == (2, 4 * 16 * 16), out_fast.shape
    assert out_fast.dtype == x.dtype
    assert jnp.array_equal(out_fast, ref), "fast path mismatch vs reference"

    # 2) Force the Pallas DMA-clone kernel (single-slice path).
    out_k1 = jax.block_until_ready(view_flatten_clone(x, force_kernel=True))
    assert out_k1.shape == (2, 4 * 16 * 16), out_k1.shape
    assert out_k1.dtype == x.dtype
    assert jnp.array_equal(out_k1, ref), "single-DMA clone mismatch vs reference"

    # 3) Force the concurrent multi-slice DMA path (starts-before-waits).
    x2 = jax.random.normal(jax.random.PRNGKey(0), (8, 4, 16, 16), dtype=jnp.float32)
    ref2 = x2.reshape(x2.shape[0], -1)
    out_k4 = jax.block_until_ready(
        view_flatten_clone(x2, force_kernel=True, num_slices=4)
    )
    assert out_k4.shape == (8, 4 * 16 * 16), out_k4.shape
    assert jnp.array_equal(out_k4, ref2), "multi-DMA clone mismatch vs reference"

    print("KERNEL_OK")
</pallas_src>

<mosaic_0001>
module attributes {stable_mosaic.version = 11 : i64} {
  func.func @kernel(%arg0: memref<2x4x16x16xf32, #tpu.memory_space<any>>, %arg1: memref<2x4x16x16xf32, #tpu.memory_space<any>>) attributes {dimension_semantics = [], scalar_prefetch = 0 : i64, scratch_operands = 0 : i64, tpu.core_type = #tpu.core_type<tc>} {
    "tpu.region"() ({
      %0 = tpu.sem_alloc : memref<1x!tpu.dma_semaphore, #tpu.memory_space<semaphore_mem>>
      %c0_i32 = arith.constant 0 : i32
      %c0_i32_0 = arith.constant 0 : i32
      %c0_i32_1 = arith.constant 0 : i32
      %c0_i32_2 = arith.constant 0 : i32
      %c0_i32_3 = arith.constant 0 : i32
      %1 = tpu.memref_slice %arg0[%c0_i32_0, %c0_i32_1, %c0_i32_2, %c0_i32_3] : memref<2x4x16x16xf32, #tpu.memory_space<any>> -> memref<2x4x16x16xf32, #tpu.memory_space<any>>
      %c0_i32_4 = arith.constant 0 : i32
      %c0_i32_5 = arith.constant 0 : i32
      %c0_i32_6 = arith.constant 0 : i32
      %c0_i32_7 = arith.constant 0 : i32
      %2 = tpu.memref_slice %arg1[%c0_i32_4, %c0_i32_5, %c0_i32_6, %c0_i32_7] : memref<2x4x16x16xf32, #tpu.memory_space<any>> -> memref<2x4x16x16xf32, #tpu.memory_space<any>>
      %3 = tpu.memref_slice %0[%c0_i32] : memref<1x!tpu.dma_semaphore, #tpu.memory_space<semaphore_mem>> -> memref<1x!tpu.dma_semaphore, #tpu.memory_space<semaphore_mem>>
      %4 = tpu.memref_squeeze %3 : memref<1x!tpu.dma_semaphore, #tpu.memory_space<semaphore_mem>> -> memref<!tpu.dma_semaphore, #tpu.memory_space<semaphore_mem>>
      tpu.enqueue_dma source(%1 : memref<2x4x16x16xf32, #tpu.memory_space<any>>) target(%2 : memref<2x4x16x16xf32, #tpu.memory_space<any>>) target_semaphore(%4 : memref<!tpu.dma_semaphore, #tpu.memory_space<semaphore_mem>>)
      %c0_i32_8 = arith.constant 0 : i32
      %c0_i32_9 = arith.constant 0 : i32
      %c0_i32_10 = arith.constant 0 : i32
      %c0_i32_11 = arith.constant 0 : i32
      %c0_i32_12 = arith.constant 0 : i32
      %5 = tpu.memref_slice %arg0[%c0_i32_9, %c0_i32_10, %c0_i32_11, %c0_i32_12] : memref<2x4x16x16xf32, #tpu.memory_space<any>> -> memref<2x4x16x16xf32, #tpu.memory_space<any>>
      %c0_i32_13 = arith.constant 0 : i32
      %c0_i32_14 = arith.constant 0 : i32
      %c0_i32_15 = arith.constant 0 : i32
      %c0_i32_16 = arith.constant 0 : i32
      %6 = tpu.memref_slice %arg1[%c0_i32_13, %c0_i32_14, %c0_i32_15, %c0_i32_16] : memref<2x4x16x16xf32, #tpu.memory_space<any>> -> memref<2x4x16x16xf32, #tpu.memory_space<any>>
      %7 = tpu.memref_slice %0[%c0_i32_8] : memref<1x!tpu.dma_semaphore, #tpu.memory_space<semaphore_mem>> -> memref<1x!tpu.dma_semaphore, #tpu.memory_space<semaphore_mem>>
      %8 = tpu.memref_squeeze %7 : memref<1x!tpu.dma_semaphore, #tpu.memory_space<semaphore_mem>> -> memref<!tpu.dma_semaphore, #tpu.memory_space<semaphore_mem>>
      tpu.wait_dma2 semaphore(%8 : memref<!tpu.dma_semaphore, #tpu.memory_space<semaphore_mem>>) src(%5 : memref<2x4x16x16xf32, #tpu.memory_space<any>>) dst(%6 : memref<2x4x16x16xf32, #tpu.memory_space<any>>)
      tpu.yield
    }) : () -> ()
    return
  }
}

</mosaic_0001>

<bundles_post_ra>
// kernel: tpu_custom_call.1
= control target key start
LH: loop header
LB: loop body
LE: loop exit
PB: predicated region body
PF: predicated region fallthrough
CT: control target
= control target key end

     0   :  { %s29_s6 = smov [#allocation2]   ;;  %s30_s7 = smov [#allocation3]   ;;  %s48_s0 = inlined_call_operand.hbm [shape: f32[2,4,16,16], index: 0, kind: input, shape index: {}]   ;;  %s49_s1 = inlined_call_operand.hbm [shape: f32[2,4,16,16], index: 1, kind: output, shape index: {}]  }
   0x1   :  { %s31_s8 = smov 0  }
   0x2   :  { %18 = dma.general %s48_s0, 2048, %s49_s1, %s29_s6, %s30_s7, [#allocation4], %s31_s8, 0  }
   0x3   :  { %27 = dma.done.wait [#allocation2], 2048 }
   0x4   :  { %28 = vsyncadd [#allocation2], 4294965248 }

</bundles_post_ra>
